<compile_context>
chip_gen: v6e
topology: v6e:2x2x1
jax: 0.10.0
libtpu: 0.0.40
codegen_flags: <defaults>
</compile_context>

<pallas_src>
import math
import functools

import jax
import jax.numpy as jnp
from jax.experimental import pallas as pl
from jax.experimental.pallas import tpu as pltpu


_LANE = 128       # lane width: last-dim alignment for MXU-facing weight tiles
_SUBLANE = 8      # sublane: second-to-last dim alignment
_MAX_TILE_B = 2048


def _cdiv(a, b):
    return -(-a // b)


def _round_up(n, m):
    return ((n + m - 1) // m) * m


# --------------------------------------------------------------------------
# Kernel
# --------------------------------------------------------------------------
def _mlp_kernel(x_ref, w1_ref, b1_ref, w2_ref, b2_ref, w3_ref, b3_ref,
                out_ref, *, activation, n_actions):
    """One batch tile: out = L3(act(L2(act(L1(x))))). Weights VMEM-resident."""
    if activation == "Tanh":
        act = jnp.tanh
    elif activation == "ReLU":
        act = lambda v: jnp.maximum(v, 0.0)
    else:
        raise ValueError(f"unsupported activation: {activation}")

    # Cast in-kernel (VPU) so the wrapper never materializes a casted copy of x.
    x = x_ref[...].astype(w1_ref.dtype)                       # (TILE_B, d_in)

    h1 = jnp.dot(x, w1_ref[...], preferred_element_type=jnp.float32) + b1_ref[...]
    h1 = act(h1)                                              # f32, (TILE_B, 128)

    h2 = jnp.dot(h1.astype(w2_ref.dtype), w2_ref[...],
                 preferred_element_type=jnp.float32) + b2_ref[...]
    h2 = act(h2)                                              # f32, (TILE_B, 64)

    h3 = jnp.dot(h2.astype(w3_ref.dtype), w3_ref[...],
                 preferred_element_type=jnp.float32) + b3_ref[...]   # (TILE_B, d_out)

    # Store only the real action columns (out block's last dim == full array dim).
    out_ref[...] = h3[:, :n_actions].astype(out_ref.dtype)


# --------------------------------------------------------------------------
# Parameter packing.
#   w1: (round_up(n_states, 8), 128)   -- rows beyond n_states are zero
#   w2: (128, 64)                      -- unpadded
#   w3: (64, round_up(n_actions, 128)) -- cols beyond n_actions are zero (sliced off)
# Biases stay f32; weights optionally bf16 for halved resident-weight DMA.
# --------------------------------------------------------------------------
def pack_params(raw, use_bf16=False):
    """raw: dict of w1,b1,w2,b2,w3,b3 with w_i stored as [in, out], b_i as [1, out]."""
    w_dtype = jnp.bfloat16 if use_bf16 else jnp.float32

    n_states, h1 = raw["w1"].shape
    h2 = raw["w2"].shape[1]
    n_actions = raw["w3"].shape[1]

    d_in = _round_up(n_states, _SUBLANE)        # tiny (or zero) pad, K of matmul 1
    d_h1 = _round_up(h1, _LANE)                 # 128 already
    d_h2 = h2                                   # 64: keep unpadded
    d_out = _round_up(n_actions, _LANE)         # one MXU tile for matmul 3

    def pad_w(w, rows, cols):
        return jnp.pad(w, ((0, rows - w.shape[0]), (0, cols - w.shape[1]))).astype(w_dtype)

    def pad_b(b, cols):
        return jnp.pad(b, ((0, 0), (0, cols - b.shape[1]))).astype(jnp.float32)

    return {
        "w1": pad_w(raw["w1"], d_in, d_h1), "b1": pad_b(raw["b1"], d_h1),
        "w2": pad_w(raw["w2"], d_h1, d_h2), "b2": pad_b(raw["b2"], d_h2),
        "w3": pad_w(raw["w3"], d_h2, d_out), "b3": pad_b(raw["b3"], d_out),
        "n_states": n_states, "n_actions": n_actions,
    }


# --------------------------------------------------------------------------
# Wrapper
# --------------------------------------------------------------------------
def neural_network_forward(x, packed, activation="Tanh"):
    """x: [B, n_states] f32.  packed: output of pack_params.  Returns [B, n_actions] f32."""
    B, n_states = x.shape
    assert n_states == packed["n_states"]
    n_actions = packed["n_actions"]

    w1, b1 = packed["w1"], packed["b1"]
    w2, b2 = packed["w2"], packed["b2"]
    w3, b3 = packed["w3"], packed["b3"]
    d_in, d_h1 = w1.shape
    d_h2 = w2.shape[1]
    d_out = w3.shape[1]

    # Tiny feature pad only when n_states isn't sublane-aligned (no-op for 8).
    if d_in != n_states:
        x = jnp.pad(x, ((0, 0), (0, d_in - n_states)))

    # Batch tiling: minimal padding, big tiles (amortize per-step overhead on
    # 1-TC chips), even tile count when split (balanced megacore on v7x).
    n_tiles = max(1, _cdiv(B, _MAX_TILE_B))
    if n_tiles > 1:
        n_tiles = _round_up(n_tiles, 2)
    tile_b = _round_up(_cdiv(B, n_tiles), _SUBLANE)
    b_pad = n_tiles * tile_b
    if b_pad != B:
        x = jnp.pad(x, ((0, b_pad - B), (0, 0)))

    flops = 2 * b_pad * (d_in * d_h1 + d_h1 * d_h2 + d_h2 * d_out)
    transcendentals = b_pad * (d_h1 + d_h2) if activation == "Tanh" else 0
    bytes_accessed = int(
        b_pad * d_in * x.dtype.itemsize
        + b_pad * n_actions * 4
        + sum(int(p.size) * p.dtype.itemsize for p in (w1, b1, w2, b2, w3, b3)))

    kernel = functools.partial(_mlp_kernel, activation=activation, n_actions=n_actions)

    out = pl.pallas_call(
        kernel,
        out_shape=jax.ShapeDtypeStruct((b_pad, n_actions), jnp.float32),
        grid=(n_tiles,),
        in_specs=[
            pl.BlockSpec((tile_b, d_in), lambda i: (i, 0)),   # x: tiled over batch
            pl.BlockSpec((d_in, d_h1), lambda i: (0, 0)),     # w1: VMEM-resident
            pl.BlockSpec((1, d_h1), lambda i: (0, 0)),        # b1
            pl.BlockSpec((d_h1, d_h2), lambda i: (0, 0)),     # w2
            pl.BlockSpec((1, d_h2), lambda i: (0, 0)),        # b2
            pl.BlockSpec((d_h2, d_out), lambda i: (0, 0)),    # w3
            pl.BlockSpec((1, d_out), lambda i: (0, 0)),       # b3
        ],
        out_specs=pl.BlockSpec((tile_b, n_actions), lambda i: (i, 0)),
        compiler_params=pltpu.CompilerParams(
            dimension_semantics=("parallel",),                # megacore on v7x
            vmem_limit_bytes=32 * 1024 * 1024,
        ),
        cost_estimate=pl.CostEstimate(
            flops=flops,
            transcendentals=transcendentals,
            bytes_accessed=bytes_accessed,
        ),
    )(x, w1, b1, w2, b2, w3, b3)

    # Only padded batch rows (if any) need slicing off; columns are already exact.
    return out[:B] if b_pad != B else out


# --------------------------------------------------------------------------
# Init + pure-JAX reference
# --------------------------------------------------------------------------
def init_params(key, n_states, n_actions):
    """PyTorch nn.Linear default init: U(-1/sqrt(fan_in), 1/sqrt(fan_in)).
    Weights stored transposed vs PyTorch, i.e. [in, out]."""
    def linear(k, fan_in, fan_out):
        kw, kb = jax.random.split(k)
        bound = 1.0 / math.sqrt(fan_in)
        w = jax.random.uniform(kw, (fan_in, fan_out), jnp.float32, -bound, bound)
        b = jax.random.uniform(kb, (1, fan_out), jnp.float32, -bound, bound)
        return w, b

    k1, k2, k3 = jax.random.split(key, 3)
    w1, b1 = linear(k1, n_states, 128)
    w2, b2 = linear(k2, 128, 64)
    w3, b3 = linear(k3, 64, n_actions)
    return {"w1": w1, "b1": b1, "w2": w2, "b2": b2, "w3": w3, "b3": b3}


def reference_forward(x, raw, activation="Tanh"):
    act = jnp.tanh if activation == "Tanh" else (lambda v: jnp.maximum(v, 0.0))
    h = act(x @ raw["w1"] + raw["b1"])
    h = act(h @ raw["w2"] + raw["b2"])
    return h @ raw["w3"] + raw["b3"]


# --------------------------------------------------------------------------
if __name__ == "__main__":
    key = jax.random.PRNGKey(0)
    k_params, k_x_small, k_x_big = jax.random.split(key, 3)

    n_states = 8        # robot observation vector
    n_actions = 4
    activation = "Tanh"

    raw = init_params(k_params, n_states, n_actions)

    # --- small, module-consistent shapes (B=2), f32 weights ---
    x_small = jax.random.normal(k_x_small, (2, n_states), dtype=jnp.float32)
    packed_f32 = pack_params(raw, use_bf16=False)
    out_small = neural_network_forward(x_small, packed_f32, activation)
    jax.block_until_ready(out_small)
    ref_small = reference_forward(x_small, raw, activation)
    assert out_small.shape == (2, n_actions)
    assert jnp.allclose(out_small, ref_small, atol=1e-4, rtol=1e-4)

    # --- larger replay-buffer-like batch, f32 weights ---
    x_big = jax.random.normal(k_x_big, (1000, n_states), dtype=jnp.float32)
    out_big = neural_network_forward(x_big, packed_f32, activation)
    jax.block_until_ready(out_big)
    ref_big = reference_forward(x_big, raw, activation)
    assert out_big.shape == (1000, n_actions)
    assert jnp.allclose(out_big, ref_big, atol=1e-4, rtol=1e-4)

    # --- batch large enough to exercise multiple grid tiles ---
    x_multi = jnp.tile(x_big, (5, 1))            # B=5000 -> 4 tiles
    out_multi = neural_network_forward(x_multi, packed_f32, activation)
    jax.block_until_ready(out_multi)
    ref_multi = jnp.tile(ref_big, (5, 1))
    assert out_multi.shape == (5000, n_actions)
    assert jnp.allclose(out_multi, ref_multi, atol=1e-4, rtol=1e-4)

    # --- bf16 weight path (x stays f32 in HBM; cast happens in-kernel) ---
    packed_bf16 = pack_params(raw, use_bf16=True)
    out_bf16 = neural_network_forward(x_big, packed_bf16, activation)
    jax.block_until_ready(out_bf16)
    assert jnp.allclose(out_bf16, ref_big, atol=1e-1, rtol=1e-1)

    # --- ReLU activation variant ---
    out_relu = neural_network_forward(x_small, packed_f32, "ReLU")
    jax.block_until_ready(out_relu)
    ref_relu = reference_forward(x_small, raw, "ReLU")
    assert jnp.allclose(out_relu, ref_relu, atol=1e-4, rtol=1e-4)

    print("KERNEL_OK")
</pallas_src>

<mosaic_0001>
module attributes {stable_mosaic.version = 11 : i64} {
  func.func @_mlp_kernel(%arg0: i32, %arg1: memref<8x8xf32, #tpu.memory_space<vmem>>, %arg2: memref<8x128xf32, #tpu.memory_space<vmem>>, %arg3: memref<1x128xf32, #tpu.memory_space<vmem>>, %arg4: memref<128x64xf32, #tpu.memory_space<vmem>>, %arg5: memref<1x64xf32, #tpu.memory_space<vmem>>, %arg6: memref<64x128xf32, #tpu.memory_space<vmem>>, %arg7: memref<1x128xf32, #tpu.memory_space<vmem>>, %arg8: memref<8x4xf32, #tpu.memory_space<vmem>>) attributes {dimension_semantics = [#tpu.dimension_semantics<parallel>], iteration_bounds = array<i64: 1>, scalar_prefetch = 0 : i64, scratch_operands = 0 : i64, tpu.core_type = #tpu.core_type<tc>, window_params = [{transform_indices = @transform_0, window_bounds = array<i64: 8, 8>}, {pipeline_mode = #tpu.pipeline_mode<synchronous>, transform_indices = @transform_1, window_bounds = array<i64: 8, 128>}, {pipeline_mode = #tpu.pipeline_mode<synchronous>, transform_indices = @transform_2, window_bounds = array<i64: 1, 128>}, {pipeline_mode = #tpu.pipeline_mode<synchronous>, transform_indices = @transform_3, window_bounds = array<i64: 128, 64>}, {pipeline_mode = #tpu.pipeline_mode<synchronous>, transform_indices = @transform_4, window_bounds = array<i64: 1, 64>}, {pipeline_mode = #tpu.pipeline_mode<synchronous>, transform_indices = @transform_5, window_bounds = array<i64: 64, 128>}, {pipeline_mode = #tpu.pipeline_mode<synchronous>, transform_indices = @transform_6, window_bounds = array<i64: 1, 128>}, {transform_indices = @transform_7, window_bounds = array<i64: 8, 4>}]} {
    %c0 = arith.constant 0 : index
    %c0_0 = arith.constant 0 : index
    %0 = vector.load %arg1[%c0, %c0_0] : memref<8x8xf32, #tpu.memory_space<vmem>>, vector<8x8xf32>
    %c0_1 = arith.constant 0 : index
    %c0_2 = arith.constant 0 : index
    %1 = vector.load %arg2[%c0_1, %c0_2] : memref<8x128xf32, #tpu.memory_space<vmem>>, vector<8x128xf32>
    %cst = arith.constant dense<0.000000e+00> : vector<8x128xf32>
    %2 = tpu.matmul %0, %1, %cst {dimension_numbers = #tpu.dot_dimension_numbers<[1], [0], [0], [1], [0, 0, 1, 1], [], []>} : vector<8x8xf32>, vector<8x128xf32>, vector<8x128xf32> -> vector<8x128xf32>
    %c0_3 = arith.constant 0 : index
    %c0_4 = arith.constant 0 : index
    %3 = vector.load %arg3[%c0_3, %c0_4] : memref<1x128xf32, #tpu.memory_space<vmem>>, vector<1x128xf32>
    %4 = vector.broadcast %3 : vector<1x128xf32> to vector<8x128xf32>
    %5 = arith.addf %2, %4 : vector<8x128xf32>
    %6 = math.tanh %5 : vector<8x128xf32>
    %c0_5 = arith.constant 0 : index
    %c0_6 = arith.constant 0 : index
    %7 = vector.load %arg4[%c0_5, %c0_6] : memref<128x64xf32, #tpu.memory_space<vmem>>, vector<128x64xf32>
    %cst_7 = arith.constant dense<0.000000e+00> : vector<8x64xf32>
    %8 = tpu.matmul %6, %7, %cst_7 {dimension_numbers = #tpu.dot_dimension_numbers<[1], [0], [0], [1], [0, 0, 1, 1], [], []>} : vector<8x128xf32>, vector<128x64xf32>, vector<8x64xf32> -> vector<8x64xf32>
    %c0_8 = arith.constant 0 : index
    %c0_9 = arith.constant 0 : index
    %9 = vector.load %arg5[%c0_8, %c0_9] : memref<1x64xf32, #tpu.memory_space<vmem>>, vector<1x64xf32>
    %10 = vector.broadcast %9 : vector<1x64xf32> to vector<8x64xf32>
    %11 = arith.addf %8, %10 : vector<8x64xf32>
    %12 = math.tanh %11 : vector<8x64xf32>
    %c0_10 = arith.constant 0 : index
    %c0_11 = arith.constant 0 : index
    %13 = vector.load %arg6[%c0_10, %c0_11] : memref<64x128xf32, #tpu.memory_space<vmem>>, vector<64x128xf32>
    %cst_12 = arith.constant dense<0.000000e+00> : vector<8x128xf32>
    %14 = tpu.matmul %12, %13, %cst_12 {dimension_numbers = #tpu.dot_dimension_numbers<[1], [0], [0], [1], [0, 0, 1, 1], [], []>} : vector<8x64xf32>, vector<64x128xf32>, vector<8x128xf32> -> vector<8x128xf32>
    %c0_13 = arith.constant 0 : index
    %c0_14 = arith.constant 0 : index
    %15 = vector.load %arg7[%c0_13, %c0_14] : memref<1x128xf32, #tpu.memory_space<vmem>>, vector<1x128xf32>
    %16 = vector.broadcast %15 : vector<1x128xf32> to vector<8x128xf32>
    %17 = arith.addf %14, %16 : vector<8x128xf32>
    %18 = vector.extract_strided_slice %17 {offsets = [0, 0], sizes = [8, 4], strides = [1, 1]} : vector<8x128xf32> to vector<8x4xf32>
    %c0_15 = arith.constant 0 : index
    %c0_16 = arith.constant 0 : index
    %19 = vector.load %arg8[%c0_15, %c0_16] : memref<8x4xf32, #tpu.memory_space<vmem>>, vector<8x4xf32>
    tpu.vector_store %arg8[%c0_15, %c0_16], %18 {strides = array<i32>} : memref<8x4xf32, #tpu.memory_space<vmem>>, vector<8x4xf32>,
    return
  }
  func.func @transform_0(%arg0: i32) -> (i32, i32) {
    %c0_i32 = arith.constant 0 : i32
    %c0_i32_0 = arith.constant 0 : i32
    return %arg0, %c0_i32 : i32, i32
  }
  func.func @transform_1(%arg0: i32) -> (i32, i32) {
    %c0_i32 = arith.constant 0 : i32
    %c0_i32_0 = arith.constant 0 : i32
    %c0_i32_1 = arith.constant 0 : i32
    return %c0_i32, %c0_i32_0 : i32, i32
  }
  func.func @transform_2(%arg0: i32) -> (i32, i32) {
    %c0_i32 = arith.constant 0 : i32
    %c0_i32_0 = arith.constant 0 : i32
    %c0_i32_1 = arith.constant 0 : i32
    return %c0_i32, %c0_i32_0 : i32, i32
  }
  func.func @transform_3(%arg0: i32) -> (i32, i32) {
    %c0_i32 = arith.constant 0 : i32
    %c0_i32_0 = arith.constant 0 : i32
    %c0_i32_1 = arith.constant 0 : i32
    return %c0_i32, %c0_i32_0 : i32, i32
  }
  func.func @transform_4(%arg0: i32) -> (i32, i32) {
    %c0_i32 = arith.constant 0 : i32
    %c0_i32_0 = arith.constant 0 : i32
    %c0_i32_1 = arith.constant 0 : i32
    return %c0_i32, %c0_i32_0 : i32, i32
  }
  func.func @transform_5(%arg0: i32) -> (i32, i32) {
    %c0_i32 = arith.constant 0 : i32
    %c0_i32_0 = arith.constant 0 : i32
    %c0_i32_1 = arith.constant 0 : i32
    return %c0_i32, %c0_i32_0 : i32, i32
  }
  func.func @transform_6(%arg0: i32) -> (i32, i32) {
    %c0_i32 = arith.constant 0 : i32
    %c0_i32_0 = arith.constant 0 : i32
    %c0_i32_1 = arith.constant 0 : i32
    return %c0_i32, %c0_i32_0 : i32, i32
  }
  func.func @transform_7(%arg0: i32) -> (i32, i32) {
    %c0_i32 = arith.constant 0 : i32
    %c0_i32_0 = arith.constant 0 : i32
    return %arg0, %c0_i32 : i32, i32
  }
}

</mosaic_0001>

<bundles_post_ra>
// kernel: tpu_custom_call.1
= control target key start
LH: loop header
LB: loop body
LE: loop exit
PB: predicated region body
PF: predicated region fallthrough
CT: control target
= control target key end

     0   :  { %vm35_vm0 = vcmask 64512   ;;  %v397_v0 = vmov 0.0   ;;  %vm398_vm1 = vmmov 0   ;;  %vm219_vm2 = vcmask 523264   ;;  %s560_s1 = inlined_call_operand.vmem [shape: f32[8,128], index: 1, kind: input, shape index: {}]   ;;  %s561_s0 = inlined_call_operand.vmem [shape: f32[8,8], index: 0, kind: input, shape index: {}]   ;;  %s562_s3 = inlined_call_operand.vmem [shape: f32[128,64], index: 3, kind: input, shape index: {}]   ;;  %s563_s2 = inlined_call_operand.vmem [shape: f32[1,128], index: 2, kind: input, shape index: {}]   ;;  %s564_s5 = inlined_call_operand.vmem [shape: f32[64,128], index: 5, kind: input, shape index: {}]   ;;  %s565_s4 = inlined_call_operand.vmem [shape: f32[1,64], index: 4, kind: input, shape index: {}]   ;;  %s566_s6 = inlined_call_operand.vmem [shape: f32[1,128], index: 6, kind: input, shape index: {}]   ;;  %s567_s7 = inlined_call_operand.vmem [shape: f32[8,4], index: 7, kind: output, shape index: {}]  }
   0x1   :  { %332 = vmatprep.subr.mxu0 %v397_v0  ;;  %v27_v1 = vld [vmem:[%s560_s1] sm:$0xff]  ;;  %334 = vmatprep.mubr.msk.f32.mxu0 %vm398_vm1, %v397_v0  ;;  %v125_v3 = vld [vmem:[%s562_s3 + $0x78] sm:$0xff]  ;;  %v124_v4 = vld [vmem:[%s562_s3 + $0x70] sm:$0xff]  ;;  %vm293_vm3 = vcmask 31744  }
   0x2   :  { %v26_v2 = vld [vmem:[%s561_s0] sm:$0xff]  ;;  %333 = vmatpush3.msra.mxu0 %v27_v1  ;;  %337 = vmatprep.subr.mxu1 %v397_v0  ;;  %v123_v5 = vld [vmem:[%s562_s3 + $0x68] sm:$0xff]  ;;  %v121_v7 = vld [vmem:[%s562_s3 + $0x58] sm:$0xff] }
   0x3   :  { %335 = vmatmul.mubr.msk.f32.vlgmr.msra.gmra.mxu0 %vm35_vm0, %v26_v2  ;;  %338 = vmatpush3.msra.mxu1 %v125_v3  ;;  %v122_v6 = vld [vmem:[%s562_s3 + $0x60] sm:$0xff]  ;;  %v120_v8 = vld [vmem:[%s562_s3 + $0x50] sm:$0xff]  ;;  %v119_v9 = vld [vmem:[%s562_s3 + $0x48] sm:$0xff] }
   0x4   :  { %339 = vmatprep.subr.mxu1 %v397_v0  ;;  %369 = vmatprep.mubr.msk.f32.mxu1 %vm398_vm1, %v397_v0  ;;  %v118_v10 = vld [vmem:[%s562_s3 + $0x40] sm:$0xff]  ;;  %v117_v11 = vld [vmem:[%s562_s3 + $0x38] sm:$0xff]  ;;  %v116_v12 = vld [vmem:[%s562_s3 + $0x30] sm:$0xff] }
   0x5   :  { %340 = vmatpush3.msra.mxu1 %v124_v4  ;;  %372 = vmatprep.subr.mxu0 %v397_v0  ;;  %v115_v13 = vld [vmem:[%s562_s3 + $0x28] sm:$0xff]  ;;  %v114_v14 = vld [vmem:[%s562_s3 + $0x20] sm:$0xff]  ;;  %v113_v15 = vld [vmem:[%s562_s3 + $0x18] sm:$0xff] }
   0x6   :  { %341 = vmatprep.subr.mxu1 %v397_v0  ;;  %388 = vmatprep.mubr.msk.f32.mxu0 %vm398_vm1, %v397_v0  ;;  %v112_v16 = vld [vmem:[%s562_s3 + $0x10] sm:$0xff]  ;;  %v111_v17 = vld [vmem:[%s562_s3 + $0x8] sm:$0xff]  ;;  %v110_v18 = vld [vmem:[%s562_s3] sm:$0xff] }
   0x7   :  { %342 = vmatpush3.msra.mxu1 %v123_v5  ;;  %v299_v19 = vld [vmem:[%s563_s2] ss:$0 sm:$0xff]  ;;  %v211_v24 = vld [vmem:[%s564_s5 + $0x38] sm:$0xff]  ;;  %v210_v25 = vld [vmem:[%s564_s5 + $0x30] sm:$0xff] }
   0x8   :  { %343 = vmatprep.subr.mxu1 %v397_v0  ;;  %373 = vmatpush3.msra.mxu0 %v211_v24  ;;  %v209_v26 = vld [vmem:[%s564_s5 + $0x28] sm:$0xff]  ;;  %v208_v27 = vld [vmem:[%s564_s5 + $0x20] sm:$0xff]  ;;  %v207_v28 = vld [vmem:[%s564_s5 + $0x18] sm:$0xff] }
   0x9   :  { %344 = vmatpush3.msra.mxu1 %v122_v6  ;;  %374 = vmatprep.subr.mxu0 %v397_v0  ;;  %v206_v29 = vld [vmem:[%s564_s5 + $0x10] sm:$0xff]  ;;  %v205_v30 = vld [vmem:[%s564_s5 + $0x8] sm:$0xff]  ;;  %v204_v31 = vld [vmem:[%s564_s5] sm:$0xff] }
   0xa   :  { %345 = vmatprep.subr.mxu1 %v397_v0  ;;  %375 = vmatpush3.msra.mxu0 %v210_v25  ;;  %v301_v32 = vld [vmem:[%s565_s4] ss:$0 sm:$0xff] }
   0xb   :  { %346 = vmatpush3.msra.mxu1 %v121_v7  ;;  %376 = vmatprep.subr.mxu0 %v397_v0  ;;  %v302_v37 = vld [vmem:[%s566_s6] ss:$0 sm:$0xff] }
   0xc   :  { %347 = vmatprep.subr.mxu1 %v397_v0  ;;  %377 = vmatpush3.msra.mxu0 %v209_v26 }
   0xd   :  { %348 = vmatpush3.msra.mxu1 %v120_v8  ;;  %378 = vmatprep.subr.mxu0 %v397_v0 }
   0xe   :  { %349 = vmatprep.subr.mxu1 %v397_v0  ;;  %379 = vmatpush3.msra.mxu0 %v208_v27 }
   0xf   :  { %350 = vmatpush3.msra.mxu1 %v119_v9  ;;  %380 = vmatprep.subr.mxu0 %v397_v0 }
  0x10   :  { %351 = vmatprep.subr.mxu1 %v397_v0  ;;  %381 = vmatpush3.msra.mxu0 %v207_v28 }
  0x11   :  { %352 = vmatpush3.msra.mxu1 %v118_v10  ;;  %382 = vmatprep.subr.mxu0 %v397_v0 }
  0x12   :  { %353 = vmatprep.subr.mxu1 %v397_v0  ;;  %383 = vmatpush3.msra.mxu0 %v206_v29 }
  0x13   :  { %354 = vmatpush3.msra.mxu1 %v117_v11  ;;  %384 = vmatprep.subr.mxu0 %v397_v0 }
  0x14   :  { %355 = vmatprep.subr.mxu1 %v397_v0  ;;  %385 = vmatpush3.msra.mxu0 %v205_v30 }
  0x15   :  { %356 = vmatpush3.msra.mxu1 %v116_v12  ;;  %386 = vmatprep.subr.mxu0 %v397_v0 }
  0x16   :  { %357 = vmatprep.subr.mxu1 %v397_v0  ;;  %387 = vmatpush3.msra.mxu0 %v204_v31 }
  0x17   :  { %358 = vmatpush3.msra.mxu1 %v115_v13 }
  0x18   :  { %359 = vmatprep.subr.mxu1 %v397_v0 }
  0x19   :  { %360 = vmatpush3.msra.mxu1 %v114_v14 }
  0x1a   :  { %361 = vmatprep.subr.mxu1 %v397_v0 }
  0x1b   :  { %362 = vmatpush3.msra.mxu1 %v113_v15 }
  0x1c   :  { %363 = vmatprep.subr.mxu1 %v397_v0 }
  0x1d   :  { %364 = vmatpush3.msra.mxu1 %v112_v16 }
  0x1e   :  { %365 = vmatprep.subr.mxu1 %v397_v0 }
  0x1f   :  { %366 = vmatpush3.msra.mxu1 %v111_v17 }
  0x20   :  { %367 = vmatprep.subr.mxu1 %v397_v0 }
  0x21   :  { %368 = vmatpush3.msra.mxu1 %v110_v18 }
  0xc3   :  { %v105_v20 = vpop.f32.mrf.mxu0 }
  0xc4   :  { %v106_v21 = vadd.f32 %v299_v19, %v105_v20 }
  0xc5   :  { %v336_v22 = vpop.f32.mrf.mxu0 }
  0xc6   :  { %393 = vtanh.f32 %v106_v21 }
  0xd3   :  { %v394_v23 = vpop.eup %393 }
  0xd4   :  { %370 = vmatmul.mubr.f32.vlgmr.msra.gmra.mxu1 %v394_v23 }
 0x194   :  { %v199_v33 = vpop.f32.mrf.mxu1 }
 0x195   :  { %v200_v34 = vadd.f32 %v301_v32, %v199_v33 }
 0x196   :  { %v371_v35 = vpop.f32.mrf.mxu1 }
 0x197   :  { %395 = vtanh.f32 %v200_v34 }
 0x1a4   :  { %v396_v36 = vpop.eup %395 }
 0x1a5   :  { %389 = vmatmul.mubr.msk.f32.vlgmr.msra.gmra.mxu0 %vm219_vm2, %v396_v36 }
 0x265   :  { %v289_v38 = vpop.f32.mrf.mxu0 }
 0x266   :  { %v290_v39 = vadd.f32 %v302_v37, %v289_v38 }
 0x267   :  { %v390_v40 = vpop.f32.mrf.mxu0 }
 0x268   :  { %294 = vst.msk [vmem:[%s567_s7] sm:$0xff] %vm293_vm3, %v290_v39 }

</bundles_post_ra>
